<compile_context>
chip_gen: v6e
topology: v6e:2x2x1
jax: 0.10.0
libtpu: 0.0.40
codegen_flags: <defaults>
</compile_context>

<pallas_src>
import functools
import math

import jax
import jax.numpy as jnp
from jax.experimental import pallas as pl
from jax.experimental.pallas import tpu as pltpu


# --------------------------------------------------------------------------
# Kernel
# --------------------------------------------------------------------------
def casper_kernel(x_ref, wcat_ref, bias_ref, whidh_ref, bh_ref, wout_ref,
                  o_ref, *, n_out, hidden_counts, slope):
    x = x_ref[...]                                                  # (Tb, Nin)

    # One fused MXU dot: [base-net output | cascade x-contributions].
    y = jnp.dot(x, wcat_ref[...], preferred_element_type=jnp.float32)

    # Base network + fused constant biases (bf + sum of output-layer biases).
    out = y[:, :n_out] + bias_ref[...]                              # (Tb, Nout)

    H = hidden_counts
    if H > 0:
        # Sequential cascade: each h_i feeds all later neurons.  Static unroll
        # (H is small); h->h weights and hidden biases are SMEM scalars.
        hs = []
        for i in range(H):
            pre = y[:, n_out + i:n_out + i + 1] + bh_ref[i]         # (Tb, 1)
            for j in range(i):
                pre = pre + hs[j] * whidh_ref[i * H + j]
            h = jnp.where(pre >= 0.0, pre, slope * pre)             # LeakyReLU
            hs.append(h)
            # Output layer i as a fused rank-1 VPU accumulate (H is small,
            # so this beats concat + a K=H MXU dot).
            out = out + h * wout_ref[i:i + 1, :]

    o_ref[...] = out.astype(o_ref.dtype)


# --------------------------------------------------------------------------
# Wrapper
# --------------------------------------------------------------------------
def prepare_casper_params(wf, bf, whidx, whidh, bh, wout, bout_sum,
                          mxu_dtype=jnp.float32):
    """One-time parameter prep (do NOT run per forward call)."""
    n_in, n_out = wf.shape
    H = whidx.shape[1]

    # Fuse the two x-matmuls: single (n_in, n_out + H) weight.
    wcat = jnp.concatenate([wf, whidx], axis=1).astype(mxu_dtype)

    # Fuse constant biases (base-net bias + sum of output-layer biases).
    bias = (bf + bout_sum).astype(jnp.float32)                      # (1, n_out)

    if H > 0:
        whidh_flat = whidh.reshape(-1).astype(jnp.float32)          # (H*H,)
        bh_flat = bh.reshape(-1).astype(jnp.float32)                # (H,)
        wout_f = wout.astype(jnp.float32)                           # (H, n_out)
    else:  # dummies, never read by the kernel
        whidh_flat = jnp.zeros((1,), jnp.float32)
        bh_flat = jnp.zeros((1,), jnp.float32)
        wout_f = jnp.zeros((1, n_out), jnp.float32)

    return dict(wcat=wcat, bias=bias, whidh=whidh_flat, bh=bh_flat,
                wout=wout_f, n_in=n_in, n_out=n_out, H=H)


def _choose_tile_b(B, max_tile_b):
    """Pick a batch tile that divides B when possible (no wrapper jnp.pad)."""
    max_tile_b = max(8, (max_tile_b // 8) * 8)
    if B <= max_tile_b:
        # Split a whole-batch block in two so both v7x TensorCores get work,
        # but only when each half is still a large multiple of 8.
        half = B // 2
        if half >= 256 and half % 8 == 0:
            return half, B
        return B, B
    t = max_tile_b
    while t >= 8:
        if B % t == 0:
            return t, B
        t -= 8
    # Fallback (B not a multiple of 8): pad the batch.
    t = max_tile_b
    return t, pl.cdiv(B, t) * t


def casper_forward(x, prep, *, max_tile_b=2048):
    """Forward pass.  `prep` comes from prepare_casper_params."""
    B, n_in = x.shape
    assert n_in == prep["n_in"]
    n_out, H = prep["n_out"], prep["H"]
    wcat = prep["wcat"]

    if x.dtype != wcat.dtype:                  # bf16 MXU path (v6e/v7x), if requested
        x = x.astype(wcat.dtype)

    tile_b, b_pad = _choose_tile_b(B, max_tile_b)
    x_p = x if b_pad == B else jnp.pad(x, ((0, b_pad - B), (0, 0)))

    Hk = prep["wout"].shape[0]                 # max(H, 1)
    kernel = functools.partial(casper_kernel, n_out=n_out,
                               hidden_counts=H, slope=0.01)

    out = pl.pallas_call(
        kernel,
        grid=(b_pad // tile_b,),
        out_shape=jax.ShapeDtypeStruct((b_pad, n_out), jnp.float32),
        in_specs=[
            pl.BlockSpec((tile_b, n_in), lambda i: (i, 0)),         # x tile
            pl.BlockSpec((n_in, n_out + H), lambda i: (0, 0)),      # [Wf | Whid_x]
            pl.BlockSpec((1, n_out), lambda i: (0, 0)),             # fused bias
            pl.BlockSpec(memory_space=pltpu.MemorySpace.SMEM),      # Whid_h (flat)
            pl.BlockSpec(memory_space=pltpu.MemorySpace.SMEM),      # b_h (flat)
            pl.BlockSpec((Hk, n_out), lambda i: (0, 0)),            # Wout
        ],
        out_specs=pl.BlockSpec((tile_b, n_out), lambda i: (i, 0)),
        compiler_params=pltpu.CompilerParams(
            dimension_semantics=("parallel",)),
    )(x_p, wcat, prep["bias"], prep["whidh"], prep["bh"], prep["wout"])

    return out if b_pad == B else out[:B]


# --------------------------------------------------------------------------
# Reference + synthetic init
# --------------------------------------------------------------------------
def casper_reference(x, wf, bf, whidx, whidh, bh, wout, bout_sum, H):
    """Plain-JAX replica of Casper.forward for correctness checking."""
    out = x @ wf + bf + bout_sum
    pre_x = x @ whidx
    hs = []
    for i in range(H):
        pre = pre_x[:, i:i + 1] + bh[:, i:i + 1]
        for j in range(i):
            pre = pre + hs[j] * whidh[i, j]
        h = jnp.where(pre >= 0.0, pre, 0.01 * pre)
        hs.append(h)
        out = out + h * wout[i:i + 1, :]
    return out


def init_params(key, n_input, n_output, hidden_counts):
    """Deterministic PyTorch-style (uniform +-1/sqrt(fan_in)) initialization."""
    keys = jax.random.split(key, 4 * hidden_counts + 2)
    k_it = iter(keys)

    bound = 1.0 / math.sqrt(n_input)
    wf = jax.random.uniform(next(k_it), (n_input, n_output), jnp.float32, -bound, bound)
    bf = jax.random.uniform(next(k_it), (1, n_output), jnp.float32, -bound, bound)

    whidx = jnp.zeros((n_input, hidden_counts), jnp.float32)
    whidh = jnp.zeros((hidden_counts, hidden_counts), jnp.float32)
    bh = jnp.zeros((1, hidden_counts), jnp.float32)
    wout = jnp.zeros((hidden_counts, n_output), jnp.float32)
    bout_sum = jnp.zeros((1, n_output), jnp.float32)

    for i in range(hidden_counts):
        fan_in = n_input + i
        b = 1.0 / math.sqrt(fan_in)
        w = jax.random.uniform(next(k_it), (fan_in,), jnp.float32, -b, b)
        whidx = whidx.at[:, i].set(w[:n_input])
        if i > 0:
            whidh = whidh.at[i, :i].set(w[n_input:])
        bh = bh.at[0, i].set(jax.random.uniform(next(k_it), (), jnp.float32, -b, b))

        # outputs[i] := Linear(1, n_output)  -> fan_in = 1, bound = 1
        wout = wout.at[i, :].set(
            jax.random.uniform(next(k_it), (n_output,), jnp.float32, -1.0, 1.0))
        bout_sum = bout_sum + jax.random.uniform(
            next(k_it), (1, n_output), jnp.float32, -1.0, 1.0)

    return wf, bf, whidx, whidh, bh, wout, bout_sum


if __name__ == "__main__":
    B, N_INPUT, N_OUTPUT, HIDDEN_COUNTS = 8, 32, 16, 4

    key = jax.random.PRNGKey(0)
    kx, kp = jax.random.split(key)
    x = jax.random.normal(kx, (B, N_INPUT), jnp.float32)

    params = init_params(kp, N_INPUT, N_OUTPUT, HIDDEN_COUNTS)
    prep = prepare_casper_params(*params)          # one-time weight prep

    out = casper_forward(x, prep)
    out = jax.block_until_ready(out)

    ref = casper_reference(x, *params, HIDDEN_COUNTS)
    assert out.shape == (B, N_OUTPUT)
    assert jnp.allclose(out, ref, atol=1e-5, rtol=1e-5), "kernel mismatch vs reference"

    print("KERNEL_OK")
</pallas_src>

<mosaic_0001>
module attributes {stable_mosaic.version = 11 : i64} {
  func.func @casper_kernel(%arg0: i32, %arg1: memref<8x32xf32, #tpu.memory_space<vmem>>, %arg2: memref<32x20xf32, #tpu.memory_space<vmem>>, %arg3: memref<1x16xf32, #tpu.memory_space<vmem>>, %arg4: memref<16xf32, #tpu.memory_space<smem>>, %arg5: memref<4xf32, #tpu.memory_space<smem>>, %arg6: memref<4x16xf32, #tpu.memory_space<vmem>>, %arg7: memref<8x16xf32, #tpu.memory_space<vmem>>) attributes {dimension_semantics = [#tpu.dimension_semantics<parallel>], iteration_bounds = array<i64: 1>, scalar_prefetch = 0 : i64, scratch_operands = 0 : i64, tpu.core_type = #tpu.core_type<tc>, window_params = [{transform_indices = @transform_0, window_bounds = array<i64: 8, 32>}, {pipeline_mode = #tpu.pipeline_mode<synchronous>, transform_indices = @transform_1, window_bounds = array<i64: 32, 20>}, {pipeline_mode = #tpu.pipeline_mode<synchronous>, transform_indices = @transform_2, window_bounds = array<i64: 1, 16>}, {transform_indices = @transform_3, window_bounds = array<i64: 16>}, {transform_indices = @transform_4, window_bounds = array<i64: 4>}, {pipeline_mode = #tpu.pipeline_mode<synchronous>, transform_indices = @transform_5, window_bounds = array<i64: 4, 16>}, {transform_indices = @transform_6, window_bounds = array<i64: 8, 16>}]} {
    %c0 = arith.constant 0 : index
    %c0_0 = arith.constant 0 : index
    %0 = vector.load %arg1[%c0, %c0_0] : memref<8x32xf32, #tpu.memory_space<vmem>>, vector<8x32xf32>
    %c0_1 = arith.constant 0 : index
    %c0_2 = arith.constant 0 : index
    %1 = vector.load %arg2[%c0_1, %c0_2] : memref<32x20xf32, #tpu.memory_space<vmem>>, vector<32x20xf32>
    %cst = arith.constant dense<0.000000e+00> : vector<8x20xf32>
    %2 = tpu.matmul %0, %1, %cst {dimension_numbers = #tpu.dot_dimension_numbers<[1], [0], [0], [1], [0, 0, 1, 1], [], []>} : vector<8x32xf32>, vector<32x20xf32>, vector<8x20xf32> -> vector<8x20xf32>
    %3 = vector.extract_strided_slice %2 {offsets = [0, 0], sizes = [8, 16], strides = [1, 1]} : vector<8x20xf32> to vector<8x16xf32>
    %c0_3 = arith.constant 0 : index
    %c0_4 = arith.constant 0 : index
    %4 = vector.load %arg3[%c0_3, %c0_4] : memref<1x16xf32, #tpu.memory_space<vmem>>, vector<1x16xf32>
    %5 = vector.broadcast %4 : vector<1x16xf32> to vector<8x16xf32>
    %6 = arith.addf %3, %5 : vector<8x16xf32>
    %7 = vector.extract_strided_slice %2 {offsets = [0, 16], sizes = [8, 1], strides = [1, 1]} : vector<8x20xf32> to vector<8x1xf32>
    %c0_5 = arith.constant 0 : index
    %8 = memref.load %arg5[%c0_5] : memref<4xf32, #tpu.memory_space<smem>>
    %9 = vector.broadcast %8 : f32 to vector<8x1xf32>
    %10 = arith.addf %7, %9 : vector<8x1xf32>
    %cst_6 = arith.constant 0.000000e+00 : f32
    %11 = vector.broadcast %cst_6 : f32 to vector<8x1xf32>
    %12 = arith.cmpf oge, %10, %11 : vector<8x1xf32>
    %cst_7 = arith.constant 0.00999999977 : f32
    %13 = vector.broadcast %cst_7 : f32 to vector<8x1xf32>
    %14 = arith.mulf %13, %10 : vector<8x1xf32>
    %15 = arith.select %12, %10, %14 : vector<8x1xi1>, vector<8x1xf32>
    %c0_8 = arith.constant 0 : index
    %c0_9 = arith.constant 0 : index
    %16 = vector.load %arg6[%c0_8, %c0_9] : memref<4x16xf32, #tpu.memory_space<vmem>>, vector<1x16xf32>
    %17 = vector.broadcast %15 : vector<8x1xf32> to vector<8x16xf32>
    %18 = vector.broadcast %16 : vector<1x16xf32> to vector<8x16xf32>
    %19 = arith.mulf %17, %18 : vector<8x16xf32>
    %20 = arith.addf %6, %19 : vector<8x16xf32>
    %21 = vector.extract_strided_slice %2 {offsets = [0, 17], sizes = [8, 1], strides = [1, 1]} : vector<8x20xf32> to vector<8x1xf32>
    %c1 = arith.constant 1 : index
    %22 = memref.load %arg5[%c1] : memref<4xf32, #tpu.memory_space<smem>>
    %23 = vector.broadcast %22 : f32 to vector<8x1xf32>
    %24 = arith.addf %21, %23 : vector<8x1xf32>
    %c4 = arith.constant 4 : index
    %25 = memref.load %arg4[%c4] : memref<16xf32, #tpu.memory_space<smem>>
    %26 = vector.broadcast %25 : f32 to vector<8x1xf32>
    %27 = arith.mulf %15, %26 : vector<8x1xf32>
    %28 = arith.addf %24, %27 : vector<8x1xf32>
    %cst_10 = arith.constant 0.000000e+00 : f32
    %29 = vector.broadcast %cst_10 : f32 to vector<8x1xf32>
    %30 = arith.cmpf oge, %28, %29 : vector<8x1xf32>
    %cst_11 = arith.constant 0.00999999977 : f32
    %31 = vector.broadcast %cst_11 : f32 to vector<8x1xf32>
    %32 = arith.mulf %31, %28 : vector<8x1xf32>
    %33 = arith.select %30, %28, %32 : vector<8x1xi1>, vector<8x1xf32>
    %c1_12 = arith.constant 1 : index
    %c0_13 = arith.constant 0 : index
    %34 = vector.load %arg6[%c1_12, %c0_13] : memref<4x16xf32, #tpu.memory_space<vmem>>, vector<1x16xf32>
    %35 = vector.broadcast %33 : vector<8x1xf32> to vector<8x16xf32>
    %36 = vector.broadcast %34 : vector<1x16xf32> to vector<8x16xf32>
    %37 = arith.mulf %35, %36 : vector<8x16xf32>
    %38 = arith.addf %20, %37 : vector<8x16xf32>
    %39 = vector.extract_strided_slice %2 {offsets = [0, 18], sizes = [8, 1], strides = [1, 1]} : vector<8x20xf32> to vector<8x1xf32>
    %c2 = arith.constant 2 : index
    %40 = memref.load %arg5[%c2] : memref<4xf32, #tpu.memory_space<smem>>
    %41 = vector.broadcast %40 : f32 to vector<8x1xf32>
    %42 = arith.addf %39, %41 : vector<8x1xf32>
    %c8 = arith.constant 8 : index
    %43 = memref.load %arg4[%c8] : memref<16xf32, #tpu.memory_space<smem>>
    %44 = vector.broadcast %43 : f32 to vector<8x1xf32>
    %45 = arith.mulf %15, %44 : vector<8x1xf32>
    %46 = arith.addf %42, %45 : vector<8x1xf32>
    %c9 = arith.constant 9 : index
    %47 = memref.load %arg4[%c9] : memref<16xf32, #tpu.memory_space<smem>>
    %48 = vector.broadcast %47 : f32 to vector<8x1xf32>
    %49 = arith.mulf %33, %48 : vector<8x1xf32>
    %50 = arith.addf %46, %49 : vector<8x1xf32>
    %cst_14 = arith.constant 0.000000e+00 : f32
    %51 = vector.broadcast %cst_14 : f32 to vector<8x1xf32>
    %52 = arith.cmpf oge, %50, %51 : vector<8x1xf32>
    %cst_15 = arith.constant 0.00999999977 : f32
    %53 = vector.broadcast %cst_15 : f32 to vector<8x1xf32>
    %54 = arith.mulf %53, %50 : vector<8x1xf32>
    %55 = arith.select %52, %50, %54 : vector<8x1xi1>, vector<8x1xf32>
    %c2_16 = arith.constant 2 : index
    %c0_17 = arith.constant 0 : index
    %56 = vector.load %arg6[%c2_16, %c0_17] : memref<4x16xf32, #tpu.memory_space<vmem>>, vector<1x16xf32>
    %57 = vector.broadcast %55 : vector<8x1xf32> to vector<8x16xf32>
    %58 = vector.broadcast %56 : vector<1x16xf32> to vector<8x16xf32>
    %59 = arith.mulf %57, %58 : vector<8x16xf32>
    %60 = arith.addf %38, %59 : vector<8x16xf32>
    %61 = vector.extract_strided_slice %2 {offsets = [0, 19], sizes = [8, 1], strides = [1, 1]} : vector<8x20xf32> to vector<8x1xf32>
    %c3 = arith.constant 3 : index
    %62 = memref.load %arg5[%c3] : memref<4xf32, #tpu.memory_space<smem>>
    %63 = vector.broadcast %62 : f32 to vector<8x1xf32>
    %64 = arith.addf %61, %63 : vector<8x1xf32>
    %c12 = arith.constant 12 : index
    %65 = memref.load %arg4[%c12] : memref<16xf32, #tpu.memory_space<smem>>
    %66 = vector.broadcast %65 : f32 to vector<8x1xf32>
    %67 = arith.mulf %15, %66 : vector<8x1xf32>
    %68 = arith.addf %64, %67 : vector<8x1xf32>
    %c13 = arith.constant 13 : index
    %69 = memref.load %arg4[%c13] : memref<16xf32, #tpu.memory_space<smem>>
    %70 = vector.broadcast %69 : f32 to vector<8x1xf32>
    %71 = arith.mulf %33, %70 : vector<8x1xf32>
    %72 = arith.addf %68, %71 : vector<8x1xf32>
    %c14 = arith.constant 14 : index
    %73 = memref.load %arg4[%c14] : memref<16xf32, #tpu.memory_space<smem>>
    %74 = vector.broadcast %73 : f32 to vector<8x1xf32>
    %75 = arith.mulf %55, %74 : vector<8x1xf32>
    %76 = arith.addf %72, %75 : vector<8x1xf32>
    %cst_18 = arith.constant 0.000000e+00 : f32
    %77 = vector.broadcast %cst_18 : f32 to vector<8x1xf32>
    %78 = arith.cmpf oge, %76, %77 : vector<8x1xf32>
    %cst_19 = arith.constant 0.00999999977 : f32
    %79 = vector.broadcast %cst_19 : f32 to vector<8x1xf32>
    %80 = arith.mulf %79, %76 : vector<8x1xf32>
    %81 = arith.select %78, %76, %80 : vector<8x1xi1>, vector<8x1xf32>
    %c3_20 = arith.constant 3 : index
    %c0_21 = arith.constant 0 : index
    %82 = vector.load %arg6[%c3_20, %c0_21] : memref<4x16xf32, #tpu.memory_space<vmem>>, vector<1x16xf32>
    %83 = vector.broadcast %81 : vector<8x1xf32> to vector<8x16xf32>
    %84 = vector.broadcast %82 : vector<1x16xf32> to vector<8x16xf32>
    %85 = arith.mulf %83, %84 : vector<8x16xf32>
    %86 = arith.addf %60, %85 : vector<8x16xf32>
    %c0_22 = arith.constant 0 : index
    %c0_23 = arith.constant 0 : index
    %87 = vector.load %arg7[%c0_22, %c0_23] : memref<8x16xf32, #tpu.memory_space<vmem>>, vector<8x16xf32>
    tpu.vector_store %arg7[%c0_22, %c0_23], %86 {strides = array<i32>} : memref<8x16xf32, #tpu.memory_space<vmem>>, vector<8x16xf32>,
    return
  }
  func.func @transform_0(%arg0: i32) -> (i32, i32) {
    %c0_i32 = arith.constant 0 : i32
    %c0_i32_0 = arith.constant 0 : i32
    return %arg0, %c0_i32 : i32, i32
  }
  func.func @transform_1(%arg0: i32) -> (i32, i32) {
    %c0_i32 = arith.constant 0 : i32
    %c0_i32_0 = arith.constant 0 : i32
    %c0_i32_1 = arith.constant 0 : i32
    return %c0_i32, %c0_i32_0 : i32, i32
  }
  func.func @transform_2(%arg0: i32) -> (i32, i32) {
    %c0_i32 = arith.constant 0 : i32
    %c0_i32_0 = arith.constant 0 : i32
    %c0_i32_1 = arith.constant 0 : i32
    return %c0_i32, %c0_i32_0 : i32, i32
  }
  func.func @transform_3(%arg0: i32) -> i32 {
    %c0_i32 = arith.constant 0 : i32
    %c0_i32_0 = arith.constant 0 : i32
    return %c0_i32 : i32
  }
  func.func @transform_4(%arg0: i32) -> i32 {
    %c0_i32 = arith.constant 0 : i32
    %c0_i32_0 = arith.constant 0 : i32
    return %c0_i32 : i32
  }
  func.func @transform_5(%arg0: i32) -> (i32, i32) {
    %c0_i32 = arith.constant 0 : i32
    %c0_i32_0 = arith.constant 0 : i32
    %c0_i32_1 = arith.constant 0 : i32
    return %c0_i32, %c0_i32_0 : i32, i32
  }
  func.func @transform_6(%arg0: i32) -> (i32, i32) {
    %c0_i32 = arith.constant 0 : i32
    %c0_i32_0 = arith.constant 0 : i32
    return %arg0, %c0_i32 : i32, i32
  }
}

</mosaic_0001>

<bundles_post_ra>
// kernel: tpu_custom_call.1
= control target key start
LH: loop header
LB: loop body
LE: loop exit
PB: predicated region body
PF: predicated region fallthrough
CT: control target
= control target key end

     0   :  { %11 = vsyncpa [#allocation4], 0  ;;  %s467_s0 = inlined_call_operand.vmem [shape: f32[8,32], index: 0, kind: input, shape index: {}]   ;;  %s468_s1 = inlined_call_operand.vmem [shape: f32[32,20], index: 1, kind: input, shape index: {}]   ;;  %s469_s2 = inlined_call_operand.vmem [shape: f32[1,16], index: 2, kind: input, shape index: {}]   ;;  %s470_s3 = inlined_call_operand.vmem [shape: f32[16], index: 3, kind: input, shape index: {}]   ;;  %s471_s4 = inlined_call_operand.vmem [shape: f32[4], index: 4, kind: input, shape index: {}]   ;;  %s472_s5 = inlined_call_operand.vmem [shape: f32[4,16], index: 5, kind: input, shape index: {}]   ;;  %s473_s6 = inlined_call_operand.hbm [shape: f32[8,16], index: 6, kind: output, shape index: {}]  }
   0x1   :  { %12 = vsyncpa [#allocation6], 0 }
   0x2   :  { %13 = vsyncpa [#allocation3], 0  ;;  %s26_s23 = sshll.u32 %s470_s3, 4  ;;  %s36_s26 = sshll.u32 %s471_s4, 4  ;;  %s27_s23 = int_to_ptr.vmem [resolvable:$true] %s26_s23  ;;  %s37_s26 = int_to_ptr.vmem [resolvable:$true] %s36_s26 }
   0x3   :  { %s321_s27 = scalar_lea.vmem %s27_s23, 16  ;;  %p326_p1 = scmp.lt.s32.totalorder %s27_s23, %s27_s23 }
   0x4   :  { %p322_p0 = scmp.ne.s32.totalorder %s27_s23, %s321_s27  ;;  %p327_p2 = scmp.lt.s32.totalorder %s321_s27, %s321_s27 }
   0x6   :  { %p328_p3 = por %p327_p2, %p326_p1 }
   0x8   :  { %p329_p4 = pnand %p328_p3, %p322_p0 }
   0xa   :  { %332 = shalt.err (!%p329_p4)
}
   0xb   :  { %s371_s28 = smov [#allocation2]   ;;  %s333_s29 = scalar_lea.vmem %s37_s26, 16 }
   0xc   :  { %29 = dma.vmem_to_smem %s27_s23, 16, %s371_s28, [#allocation4]  }
   0xd   :  { %p334_p5 = scmp.ne.s32.totalorder %s37_s26, %s333_s29  ;;  %p338_p6 = scmp.lt.s32.totalorder %s37_s26, %s37_s26 }
   0xe   :  { %p339_p7 = scmp.lt.s32.totalorder %s333_s29, %s333_s29 }
  0x10   :  { %p340_p8 = por %p339_p7, %p338_p6 }
  0x12   :  { %p341_p9 = pnand %p340_p8, %p334_p5 }
  0x14   :  { %344 = shalt.err (!%p341_p9)
}
  0x15   :  { %s372_s3 = smov [#allocation5]  }
  0x16   :  { %39 = dma.vmem_to_smem %s37_s26, 16, %s372_s3, [#allocation6]  }
  0x17   :  { %365 = dma.done.wait [#allocation4], 16  }
  0x18   :  { %366 = vsyncadd [#allocation4], 4294967280 }
  0x19   :  { %367 = dma.done.wait [#allocation6], 16  }
  0x1a   :  { %368 = vsyncadd [#allocation6], 4294967280 }
  0x1b   :  { %48 = sfence }
  0x1c   :  { %v53_v0 = vld [vmem:[%s468_s1 + $0x18] sm:$0xff]  ;;  %v373_v1 = vmov 0.0   ;;  %v52_v2 = vld [vmem:[%s468_s1 + $0x10] sm:$0xff]  ;;  %vm374_vm0 = vmmov 0   ;;  %v51_v3 = vld [vmem:[%s468_s1 + $0x8] sm:$0xff]  ;;  %vm54_vm1 = vcmask 261120  }
  0x1d   :  { %294 = vmatprep.subr.mxu0 %v373_v1  ;;  %302 = vmatprep.mubr.msk.f32.mxu0 %vm374_vm0, %v373_v1  ;;  %v50_v4 = vld [vmem:[%s468_s1] sm:$0xff]  ;;  %s136_s15 = sld [smem:[#allocation5]]  ;;  %v375_v12 = vmov 16   ;;  %s377_s1 = smov 2   ;;  %v378_v24 = vmov 17   ;;  %v380_v33 = vmov 19  }
  0x1e   :  { %295 = vmatpush3.msra.mxu0 %v53_v0  ;;  %v49_v5 = vld [vmem:[%s467_s0] sm:$0xff]  ;;  %s278_s16 = sld [smem:[#allocation2 + $0x4]]  ;;  %317 = vset.pattern.permute.xlu0 %v375_v12  ;;  %s376_s0 = smov 1   ;;  %v381_v41 = vmov 18   ;;  %vm256_vm6 = vcmask 130048  }
  0x1f   :  { %296 = vmatprep.subr.mxu0 %v373_v1  ;;  %s281_s17 = sld [smem:[#allocation2 + $0x8]]  ;;  %318 = vset.pattern.permute.xlu1 %v378_v24  ;;  %s379_s22 = smov 3   ;;  %v276_v53 = vld [vmem:[%s472_s5] ss:$0 sm:$0xff]  ;;  %v279_v56 = vld [vmem:[%s472_s5 + $0x1] ss:$0 sm:$0xff] }
  0x20   :  { %297 = vmatpush3.msra.mxu0 %v52_v2  ;;  %s277_s18 = sld [smem:[#allocation5 + $0x1]]  ;;  %v275_v55 = vld [vmem:[%s469_s2] ss:$0 sm:$0xff]  ;;  %v283_v58 = vld [vmem:[%s472_s5 + $0x2] ss:$0 sm:$0xff]  ;;  %s382_s2 = smov [#allocation7]  }
  0x21   :  { %298 = vmatprep.subr.mxu0 %v373_v1  ;;  %s286_s19 = sld [smem:[#allocation2 + $0xd]]  ;;  %v288_v0 = vld [vmem:[%s472_s5 + $0x3] ss:$0 sm:$0xff]  ;;  %s264_s10 = sshll.u32 %s382_s2, 4  ;;  %s265_s10 = int_to_ptr.vmem [resolvable:$true] %s264_s10 }
  0x22   :  { %299 = vmatpush3.msra.mxu0 %v51_v3  ;;  %s282_s20 = sld [smem:[#allocation2 + $0x9]]  ;;  %s345_s11 = scalar_lea.vmem %s265_s10, 128 }
  0x23   :  { %300 = vmatprep.subr.mxu0 %v373_v1  ;;  %v137_v6 = vstv %s136_s15  ;;  %s285_s21 = sld [smem:[#allocation2 + $0xc]]  ;;  %p346_p10 = scmp.ne.s32.totalorder %s265_s10, %s345_s11 }
  0x24   :  { %301 = vmatpush3.msra.mxu0 %v50_v4  ;;  %v158_v11 = vstv %s278_s16  ;;  %s280_s23 = sld [smem:[#allocation5 + $0x2]]  ;;  %p350_p11 = scmp.lt.s32.totalorder %s265_s10, %s265_s10 }
  0x25   :  { %303 = vmatmul.mubr.msk.f32.vlgmr.msra.gmra.mxu0 %vm54_vm1, %v49_v5  ;;  %v184_v15 = vstv %s281_s17  ;;  %s287_s24 = sld [smem:[#allocation2 + $0xe]]  ;;  %p351_p12 = scmp.lt.s32.totalorder %s345_s11, %s345_s11 }
  0x26   :  { %v155_v17 = vstv %s277_s18  ;;  %s284_s25 = sld [smem:[#allocation5 + $0x3]] }
  0x27   :  { %v226_v22 = vstv %s286_s19  ;;  %p352_p13 = por %p351_p12, %p350_p11 }
  0x28   :  { %v192_v23 = vstv %s282_s20 }
  0x29   :  { %v218_v28 = vstv %s285_s21  ;;  %p353_p0 = pnand %p352_p13, %p346_p10 }
  0x2a   :  { %v181_v30 = vstv %s280_s23 }
  0x2b   :  { %v234_v38 = vstv %s287_s24 }
  0x2c   :  { %v215_v42 = vstv %s284_s25 }
  0xe5   :  { %v439_v7 = vpop.f32.mrf.mxu0 }
  0xe6   :  { %v138_v8 = vadd.f32 %v137_v6, %v439_v7  ;;  %v156_v18 = vadd.f32 %v155_v17, %v439_v7  ;;  %v182_v32 = vadd.f32 %v181_v30, %v439_v7  ;;  %v216_v44 = vadd.f32 %v215_v42, %v439_v7 }
  0xe7   :  { %v304_v9 = vpop.f32.mrf.mxu0  ;;  %v135_v60 = vadd.f32 %v275_v55, %v439_v7 }
  0xe8   :  { %vm139_vm2 = vcmp.ge.f32.partialorder %v138_v8, 0.0  ;;  %v140_v10 = vmul.f32 0.01, %v138_v8 }
  0xea   :  { %v141_v13 = vsel %vm139_vm2, %v138_v8, %v140_v10 }
  0xeb   :  { %v159_v14 = vmul.f32 %v158_v11, %v141_v13  ;;  %v185_v16 = vmul.f32 %v184_v15, %v141_v13  ;;  %v219_v29 = vmul.f32 %v218_v28, %v141_v13 }
  0xed   :  { %161 = vrot.lane.b32.xlu0 %v159_v14, %s376_s0 }
  0xf1   :  { %187 = vrot.lane.b32.xlu0 %v185_v16, %s377_s1 }
 0x15f   :  { %v162_v19 = vpop.permute.xlu0 %161 }
 0x160   :  { %v164_v20 = vadd.f32 %v162_v19, %v156_v18 }
 0x162   :  { %vm165_vm3 = vcmp.ge.f32.partialorder %v164_v20, 0.0  ;;  %v166_v21 = vmul.f32 0.01, %v164_v20 }
 0x163   :  { %v188_v31 = vpop.permute.xlu0 %187 }
 0x164   :  { %v167_v25 = vsel %vm165_vm3, %v164_v20, %v166_v21  ;;  %v190_v34 = vadd.f32 %v188_v31, %v182_v32 }
 0x165   :  { %v227_v26 = vmul.f32 %v226_v22, %v167_v25  ;;  %v193_v27 = vmul.f32 %v192_v23, %v167_v25 }
 0x167   :  { %229 = vrot.lane.b32.xlu0 %v227_v26, %s377_s1  ;;  %195 = vrot.lane.b32.xlu1 %v193_v27, %s376_s0 }
 0x16b   :  { %145 = vperm.xlu0 %317, %v141_v13   ;;  %221 = vrot.lane.b32.xlu1 %v219_v29, %s379_s22 }
 0x16f   :  { %320 = vset.pattern.permute.xlu0 %v380_v33 }
 0x1d9   :  { %v196_v35 = vpop.permute.xlu1 %195  ;;  %v230_v46 = vpop.permute.xlu0 %229 }
 0x1da   :  { %v198_v36 = vadd.f32 %v196_v35, %v190_v34 }
 0x1dc   :  { %vm199_vm4 = vcmp.ge.f32.partialorder %v198_v36, 0.0  ;;  %v200_v37 = vmul.f32 0.01, %v198_v36 }
 0x1dd   :  { %v222_v43 = vpop.permute.xlu1 %221 }
 0x1de   :  { %v201_v39 = vsel %vm199_vm4, %v198_v36, %v200_v37  ;;  %v224_v45 = vadd.f32 %v222_v43, %v216_v44 }
 0x1df   :  { %v235_v40 = vmul.f32 %v234_v38, %v201_v39 }
 0x1e0   :  { %v232_v47 = vadd.f32 %v230_v46, %v224_v45 }
 0x1e1   :  { %237 = vrot.lane.b32.xlu1 %v235_v40, %s376_s0 }
 0x1e5   :  { %171 = vperm.xlu1 %318, %v167_v25  }
 0x1e6   :  { %v146_v54 = vpop.permute.xlu0 %145 }
 0x1e7   :  { %v152_v57 = vmul.f32 %v276_v53, %v146_v54 }
 0x1e9   :  { %319 = vset.pattern.permute.xlu1 %v381_v41  ;;  %v153_v62 = vadd.f32 %v152_v57, %v135_v60 }
 0x1ea   :  { %205 = vperm.xlu1 %319, %v201_v39  }
 0x253   :  { %v238_v48 = vpop.permute.xlu1 %237 }
 0x254   :  { %v240_v49 = vadd.f32 %v238_v48, %v232_v47 }
 0x256   :  { %v242_v50 = vmul.f32 0.01, %v240_v49  ;;  %vm241_vm5 = vcmp.ge.f32.partialorder %v240_v49, 0.0 }
 0x258   :  { %v243_v51 = vsel %vm241_vm5, %v240_v49, %v242_v50 }
 0x259   :  { %247 = vperm.xlu0 %320, %v243_v51  }
 0x260   :  { %v172_v52 = vpop.permute.xlu1 %171 }
 0x261   :  { %v178_v61 = vmul.f32 %v279_v56, %v172_v52 }
 0x263   :  { %v179_v1 = vadd.f32 %v178_v61, %v153_v62 }
 0x265   :  { %v206_v59 = vpop.permute.xlu1 %205 }
 0x266   :  { %v212_v63 = vmul.f32 %v283_v58, %v206_v59 }
 0x268   :  { %v213_v3 = vadd.f32 %v212_v63, %v179_v1 }
 0x2d4   :  { %v248_v2 = vpop.permute.xlu0 %247 }
 0x2d5   :  { %v254_v4 = vmul.f32 %v288_v0, %v248_v2 }
 0x2d7   :  { %v255_v5 = vadd.f32 %v254_v4, %v213_v3 }
 0x2d9   :  { %257 = vst.msk [vmem:[#allocation7] sm:$0xff] %vm256_vm6, %v255_v5 }
 0x2da   :  { %356 = shalt.err (!%p353_p0)
}
 0x2db   :  { %267 = dma.vmem_to_hbm [thread:$0]  %s265_s10, 128, %s473_s6, [#allocation3]  }
 0x2dc   :  { %369 = dma.done.wait [#allocation3], 128  }
 0x2dd   :  { %370 = vsyncadd [#allocation3], 4294967168 }
 0x2de   :  { %271 = vsyncpa [#allocation3], 1 }
 0x2df   :  { %272 = vsyncpa [#allocation4], 1 }
 0x2e0   :  { %273 = vsyncpa [#allocation6], 1 }

</bundles_post_ra>
